<compile_context>
chip_gen: v5e
topology: v5e:2x2
jax: 0.10.0
libtpu: 0.0.40
codegen_flags: <defaults>
</compile_context>

<pallas_src>
import functools

import jax
import jax.numpy as jnp
from jax.experimental import pallas as pl
from jax.experimental.pallas import tpu as pltpu

_LANE = 128              # vreg lane width; feature dims padded to multiples
_BATCH_ALIGN = 16        # batch tiles: multiple of bf16 (16) & f32 (8) sublane packing
_VMEM_BUDGET = 40 * 1024 * 1024   # conservative: fits v7x's 64 MiB physical VMEM


def _round_up(x, m):
    return (x + m - 1) // m * m


# ---------------------------------------------------------------------------
# Kernel: full D2RL forward for one batch tile.  Weights are VMEM-resident
# (constant index_map); the fused pre-activation/skip slab lives in VMEM
# scratch; per-layer working set is h + z + one Hp-wide skip slice.
# ---------------------------------------------------------------------------
def _d2rl_kernel(num_layers, hp,
                 x_ref,       # (TB, D_in)          bf16
                 w_pre_ref,   # (D_in, (L+1)*Hp)    bf16   [W_in | W_x(0..L-1)]
                 b_pre_ref,   # (1, (L+1)*Hp)       f32    [b_in | b_body(0..L-1)]
                 wb_h_ref,    # (L, Hp, Hp)         bf16   body weight, hidden part
                 w_out_ref,   # (Hp, Op)            bf16
                 b_out_ref,   # (1, Op)             f32
                 o_ref,       # (TB, Op)            f32
                 pre_ref):    # (TB, (L+1)*Hp)      f32    VMEM scratch
    xu = x_ref[...]                                   # bf16 already

    # Fused prologue: one wide matmul gives the input layer AND every body
    # layer's loop-invariant skip term  xu @ W_x[i] + b_body[i].
    pre_ref[...] = (jnp.dot(xu, w_pre_ref[...], preferred_element_type=jnp.float32)
                    + b_pre_ref[...])

    # input layer: h = relu(first Hp lanes)
    h = jnp.maximum(pre_ref[:, :hp], 0.0)

    # body layers: h = relu(h @ W_h[i] + skip_i)   (serial dependency chain)
    if num_layers >= 8:
        # fori_loop bounds live ranges for deep nets (static unroll for LLO).
        def body(i, h):
            z = jnp.dot(h.astype(jnp.bfloat16), wb_h_ref[i],
                        preferred_element_type=jnp.float32)
            off = pl.multiple_of((i + 1) * hp, hp)
            return jnp.maximum(z + pre_ref[:, pl.ds(off, hp)], 0.0)
        h = jax.lax.fori_loop(0, num_layers, body, h, unroll=True)
    else:
        for i in range(num_layers):
            z = jnp.dot(h.astype(jnp.bfloat16), wb_h_ref[i],
                        preferred_element_type=jnp.float32)
            h = jnp.maximum(z + pre_ref[:, (i + 1) * hp:(i + 2) * hp], 0.0)

    # output layer + sigmoid (f32 epilogue)
    out = jnp.dot(h.astype(jnp.bfloat16), w_out_ref[...],
                  preferred_element_type=jnp.float32)
    o_ref[...] = jax.nn.sigmoid(out + b_out_ref[...])


# ---------------------------------------------------------------------------
# Parameter init (unpadded, f32 — mirrors the PyTorch module's init)
# ---------------------------------------------------------------------------
def _xavier_uniform(key, fan_in, fan_out):
    bound = jnp.sqrt(6.0 / (fan_in + fan_out))
    return jax.random.uniform(key, (fan_in, fan_out), jnp.float32, -bound, bound)


def init_densenet_nodiag_params(key, num_obj, obj_dim, hidden_dim, num_layers):
    """Deterministic synthetic init (Xavier-uniform weights, zero biases)."""
    d_in = num_obj * obj_dim
    d_out = num_obj * num_obj
    body_in = d_in + hidden_dim

    keys = jax.random.split(key, 2 + num_layers)
    w_in = _xavier_uniform(keys[0], d_in, hidden_dim)            # (D, H)
    b_in = jnp.zeros((1, hidden_dim), jnp.float32)

    wb_full = jnp.stack(
        [_xavier_uniform(keys[2 + i], body_in, hidden_dim) for i in range(num_layers)]
    )                                                            # (L, H+D, H)
    # torch concat order is [hidden, input] -> first H rows act on h, rest on xu
    wb_h = wb_full[:, :hidden_dim, :]                            # (L, H, H)
    wb_x = wb_full[:, hidden_dim:, :]                            # (L, D, H)
    b_body = jnp.zeros((num_layers, 1, hidden_dim), jnp.float32)

    w_out = _xavier_uniform(keys[1], hidden_dim, d_out)          # (H, O)
    b_out = jnp.zeros((1, d_out), jnp.float32)

    return dict(w_in=w_in, b_in=b_in, wb_h=wb_h, wb_x=wb_x,
                b_body=b_body, w_out=w_out, b_out=b_out)


# ---------------------------------------------------------------------------
# Pack params: pad feature dims, cast weights to bf16, fuse W_in with the
# flattened per-layer skip weights into one prologue matmul operand.  Padded
# weight rows/cols and biases are zero, so padded lanes stay exactly zero
# through the whole net and are sliced off after the pallas_call.
# ---------------------------------------------------------------------------
def pack_params_for_kernel(params, *, feature_align=None, weight_dtype=jnp.bfloat16):
    w_in = params["w_in"]                                        # (D_in, H)
    d_in, h = w_in.shape
    num_layers = params["wb_h"].shape[0]
    d_out = params["w_out"].shape[1]

    if feature_align is None:
        # 256 fills the v6e/v7x 256x256 MXU when hidden_dim > 128; on v5e
        # (4x 128x128 MXUs) a caller may pass feature_align=128 instead.
        feature_align = 256 if h > 128 else _LANE
    hp = _round_up(h, feature_align)
    op = _round_up(d_out, _LANE)

    w_in_p = jnp.pad(w_in, ((0, 0), (0, hp - h)))
    b_in_p = jnp.pad(params["b_in"], ((0, 0), (0, hp - h)))

    wb_h_p = jnp.pad(params["wb_h"],
                     ((0, 0), (0, hp - h), (0, hp - h))).astype(weight_dtype)

    wb_x_p = jnp.pad(params["wb_x"], ((0, 0), (0, 0), (0, hp - h)))      # (L, D_in, Hp)
    wb_x_flat = jnp.transpose(wb_x_p, (1, 0, 2)).reshape(d_in, num_layers * hp)
    b_body_p = jnp.pad(params["b_body"], ((0, 0), (0, 0), (0, hp - h)))
    b_skip = b_body_p.reshape(1, num_layers * hp)

    # Fused prologue operand:  xu @ [W_in | W_x(0) | ... | W_x(L-1)] + [b_in | b_body]
    w_pre = jnp.concatenate([w_in_p, wb_x_flat], axis=1).astype(weight_dtype)
    b_pre = jnp.concatenate([b_in_p, b_skip], axis=1).astype(jnp.float32)

    w_out_p = jnp.pad(params["w_out"],
                      ((0, hp - h), (0, op - d_out))).astype(weight_dtype)
    b_out_p = jnp.pad(params["b_out"], ((0, 0), (0, op - d_out))).astype(jnp.float32)

    return dict(w_pre=w_pre, b_pre=b_pre, wb_h=wb_h_p, w_out=w_out_p, b_out=b_out_p)


# ---------------------------------------------------------------------------
# Batch-tile selection under an explicit VMEM budget.
# ---------------------------------------------------------------------------
def _row_vmem_bytes(d_in, hp, op, num_layers):
    # double-buffered x (bf16) + out (f32) tiles, the (L+1)*Hp f32 pre/skip
    # scratch slab, plus headroom for the live h / z values in the layer loop.
    return 2 * d_in * 2 + 2 * op * 4 + (num_layers + 1) * hp * 4 + 4 * hp * 4


def _choose_batch_tile(b, block_b, d_in, hp, op, num_layers, weight_bytes):
    block_b = _round_up(max(block_b, _BATCH_ALIGN), _BATCH_ALIGN)
    row_bytes = _row_vmem_bytes(d_in, hp, op, num_layers)
    # weights are double-buffered by the default pipeline (pipeline_mode=
    # pl.Buffered(1) on the weight specs would halve this for huge configs).
    avail = max(_VMEM_BUDGET - 2 * weight_bytes, _BATCH_ALIGN * row_bytes)
    tb_vmem = max(_BATCH_ALIGN, (avail // row_bytes) // _BATCH_ALIGN * _BATCH_ALIGN)
    # aim for >= 2 grid steps so the "parallel" batch axis can spread over both
    # TensorCores on v7x (moot on v5e/v6e's single TC)
    tb_split = _round_up(max(1, -(-b // 2)), _BATCH_ALIGN)
    return max(_BATCH_ALIGN, min(block_b, tb_vmem, tb_split))


# ---------------------------------------------------------------------------
# Forward wrapper
# ---------------------------------------------------------------------------
@functools.partial(jax.jit,
                   static_argnames=("num_obj", "obj_dim", "num_layers", "block_b"))
def densenet_nodiag_forward(packed, x, *, num_obj, obj_dim, num_layers,
                            block_b=1024):
    """Equivalent of DenseNetNoDiag.forward.

    x: (B, num_obj, obj_dim) float32
    returns: (B, num_obj, num_obj) sigmoid edge probabilities
    """
    b = x.shape[0]
    d_in = num_obj * obj_dim
    d_out = num_obj * num_obj
    hp = packed["wb_h"].shape[1]
    op = packed["w_out"].shape[1]
    pre_n = packed["w_pre"].shape[1]         # (L+1)*Hp

    # torch.flatten(start_dim=1); bf16 in the wrapper halves the x-tile DMA
    xu = x.reshape(b, d_in).astype(jnp.bfloat16)

    weight_bytes = sum(int(v.size) * v.dtype.itemsize for v in packed.values())
    tb = _choose_batch_tile(b, block_b, d_in, hp, op, num_layers, weight_bytes)
    b_pad = _round_up(b, tb)
    if b_pad != b:
        xu = jnp.pad(xu, ((0, b_pad - b), (0, 0)))
    grid = (b_pad // tb,)

    footprint = 2 * weight_bytes + tb * _row_vmem_bytes(d_in, hp, op, num_layers)
    vmem_limit = int(min(100 << 20, max(32 << 20, footprint * 3 // 2)))

    kernel = functools.partial(_d2rl_kernel, num_layers, hp)

    flops = 2 * b_pad * (d_in * pre_n + num_layers * hp * hp + hp * op)
    bytes_accessed = weight_bytes + int(xu.size) * 2 + b_pad * op * 4
    cost = pl.CostEstimate(flops=flops, transcendentals=b_pad * op,
                           bytes_accessed=bytes_accessed)

    out_flat = pl.pallas_call(
        kernel,
        out_shape=jax.ShapeDtypeStruct((b_pad, op), jnp.float32),
        grid=grid,
        in_specs=[
            pl.BlockSpec((tb, d_in), lambda i: (i, 0)),            # x: batch-tiled
            pl.BlockSpec((d_in, pre_n), lambda i: (0, 0)),         # weights resident
            pl.BlockSpec((1, pre_n), lambda i: (0, 0)),
            pl.BlockSpec((num_layers, hp, hp), lambda i: (0, 0, 0)),
            pl.BlockSpec((hp, op), lambda i: (0, 0)),
            pl.BlockSpec((1, op), lambda i: (0, 0)),
        ],
        out_specs=pl.BlockSpec((tb, op), lambda i: (i, 0)),
        scratch_shapes=[pltpu.VMEM((tb, pre_n), jnp.float32)],     # pre/skip slab
        compiler_params=pltpu.CompilerParams(
            dimension_semantics=("parallel",),                     # megacore on v7x
            vmem_limit_bytes=vmem_limit),
        cost_estimate=cost,
    )(xu, packed["w_pre"], packed["b_pre"], packed["wb_h"],
      packed["w_out"], packed["b_out"])

    return out_flat[:b, :d_out].reshape(b, num_obj, num_obj)


# ---------------------------------------------------------------------------
# Pure-JAX f32 reference (mirrors the PyTorch control flow) for a sanity check.
# ---------------------------------------------------------------------------
def _reference(params, x, num_obj, obj_dim, num_layers):
    b = x.shape[0]
    xu = x.reshape(b, num_obj * obj_dim)
    h = jax.nn.relu(xu @ params["w_in"] + params["b_in"])
    x1 = jnp.concatenate([h, xu], axis=1)
    for i in range(num_layers):
        w_full = jnp.concatenate([params["wb_h"][i], params["wb_x"][i]], axis=0)
        x1 = jax.nn.relu(x1 @ w_full + params["b_body"][i])
        if i != num_layers - 1:
            x1 = jnp.concatenate([x1, xu], axis=1)
    out = x1 @ params["w_out"] + params["b_out"]
    return jax.nn.sigmoid(out).reshape(b, num_obj, num_obj)


if __name__ == "__main__":
    NUM_OBJ, OBJ_DIM, HIDDEN, LAYERS, BATCH = 4, 4, 32, 4, 32

    key = jax.random.PRNGKey(0)
    pkey, xkey = jax.random.split(key)
    params = init_densenet_nodiag_params(pkey, NUM_OBJ, OBJ_DIM, HIDDEN, LAYERS)
    packed = pack_params_for_kernel(params)
    x = jax.random.normal(xkey, (BATCH, NUM_OBJ, OBJ_DIM), jnp.float32)

    # block_b=16 at BATCH=32 -> a 2-step batch grid: exercises the tile
    # pipeline and the >=2-grid-step path (production callers keep the
    # default block_b=1024).
    out = densenet_nodiag_forward(packed, x, num_obj=NUM_OBJ, obj_dim=OBJ_DIM,
                                  num_layers=LAYERS, block_b=16)
    out = jax.block_until_ready(out)

    ref = _reference(params, x, NUM_OBJ, OBJ_DIM, LAYERS)
    assert out.shape == (BATCH, NUM_OBJ, NUM_OBJ), out.shape
    # bf16 weights/activation operands on the MXU (f32 accumulation) vs f32 ref.
    err = float(jnp.max(jnp.abs(out - ref)))
    assert err < 2e-2, "max abs err = %f" % err

    print("KERNEL_OK")
</pallas_src>

<mosaic_0001>
module attributes {stable_mosaic.version = 11 : i64} {
  func.func @_d2rl_kernel(%arg0: i32, %arg1: memref<16x16xbf16, #tpu.memory_space<vmem>>, %arg2: memref<16x640xbf16, #tpu.memory_space<vmem>>, %arg3: memref<1x640xf32, #tpu.memory_space<vmem>>, %arg4: memref<4x128x128xbf16, #tpu.memory_space<vmem>>, %arg5: memref<128x128xbf16, #tpu.memory_space<vmem>>, %arg6: memref<1x128xf32, #tpu.memory_space<vmem>>, %arg7: memref<16x128xf32, #tpu.memory_space<vmem>>, %arg8: memref<16x640xf32, #tpu.memory_space<vmem>>) attributes {dimension_semantics = [#tpu.dimension_semantics<parallel>], iteration_bounds = array<i64: 2>, scalar_prefetch = 0 : i64, scratch_operands = 1 : i64, tpu.core_type = #tpu.core_type<tc>, window_params = [{transform_indices = @transform_0, window_bounds = array<i64: 16, 16>}, {pipeline_mode = #tpu.pipeline_mode<synchronous>, transform_indices = @transform_1, window_bounds = array<i64: 16, 640>}, {pipeline_mode = #tpu.pipeline_mode<synchronous>, transform_indices = @transform_2, window_bounds = array<i64: 1, 640>}, {pipeline_mode = #tpu.pipeline_mode<synchronous>, transform_indices = @transform_3, window_bounds = array<i64: 4, 128, 128>}, {pipeline_mode = #tpu.pipeline_mode<synchronous>, transform_indices = @transform_4, window_bounds = array<i64: 128, 128>}, {pipeline_mode = #tpu.pipeline_mode<synchronous>, transform_indices = @transform_5, window_bounds = array<i64: 1, 128>}, {transform_indices = @transform_6, window_bounds = array<i64: 16, 128>}]} {
    %c0 = arith.constant 0 : index
    %c0_0 = arith.constant 0 : index
    %0 = vector.load %arg1[%c0, %c0_0] : memref<16x16xbf16, #tpu.memory_space<vmem>>, vector<16x16xbf16>
    %c0_1 = arith.constant 0 : index
    %c0_2 = arith.constant 0 : index
    %1 = vector.load %arg2[%c0_1, %c0_2] : memref<16x640xbf16, #tpu.memory_space<vmem>>, vector<16x640xbf16>
    %cst = arith.constant dense<0.000000e+00> : vector<16x640xf32>
    %2 = tpu.matmul %0, %1, %cst {dimension_numbers = #tpu.dot_dimension_numbers<[1], [0], [0], [1], [0, 0, 1, 1], [], []>} : vector<16x16xbf16>, vector<16x640xbf16>, vector<16x640xf32> -> vector<16x640xf32>
    %c0_3 = arith.constant 0 : index
    %c0_4 = arith.constant 0 : index
    %3 = vector.load %arg3[%c0_3, %c0_4] : memref<1x640xf32, #tpu.memory_space<vmem>>, vector<1x640xf32>
    %4 = vector.broadcast %3 : vector<1x640xf32> to vector<16x640xf32>
    %5 = arith.addf %2, %4 : vector<16x640xf32>
    %c0_5 = arith.constant 0 : index
    %c0_6 = arith.constant 0 : index
    %6 = vector.load %arg8[%c0_5, %c0_6] : memref<16x640xf32, #tpu.memory_space<vmem>>, vector<16x640xf32>
    tpu.vector_store %arg8[%c0_5, %c0_6], %5 {strides = array<i32>} : memref<16x640xf32, #tpu.memory_space<vmem>>, vector<16x640xf32>,
    %c0_7 = arith.constant 0 : index
    %c0_8 = arith.constant 0 : index
    %7 = vector.load %arg8[%c0_7, %c0_8] : memref<16x640xf32, #tpu.memory_space<vmem>>, vector<16x128xf32>
    %cst_9 = arith.constant 0.000000e+00 : f32
    %8 = vector.broadcast %cst_9 : f32 to vector<16x128xf32>
    %9 = arith.maximumf %7, %8 : vector<16x128xf32>
    %10 = arith.truncf %9 : vector<16x128xf32> to vector<16x128xbf16>
    %c0_10 = arith.constant 0 : index
    %c0_11 = arith.constant 0 : index
    %c0_12 = arith.constant 0 : index
    %11 = vector.load %arg4[%c0_10, %c0_11, %c0_12] : memref<4x128x128xbf16, #tpu.memory_space<vmem>>, vector<1x128x128xbf16>
    %12 = vector.shape_cast %11 : vector<1x128x128xbf16> to vector<128x128xbf16>
    %cst_13 = arith.constant dense<0.000000e+00> : vector<16x128xf32>
    %13 = tpu.matmul %10, %12, %cst_13 {dimension_numbers = #tpu.dot_dimension_numbers<[1], [0], [0], [1], [0, 0, 1, 1], [], []>} : vector<16x128xbf16>, vector<128x128xbf16>, vector<16x128xf32> -> vector<16x128xf32>
    %c0_14 = arith.constant 0 : index
    %c128 = arith.constant 128 : index
    %14 = vector.load %arg8[%c0_14, %c128] : memref<16x640xf32, #tpu.memory_space<vmem>>, vector<16x128xf32>
    %15 = arith.addf %13, %14 : vector<16x128xf32>
    %cst_15 = arith.constant 0.000000e+00 : f32
    %16 = vector.broadcast %cst_15 : f32 to vector<16x128xf32>
    %17 = arith.maximumf %15, %16 : vector<16x128xf32>
    %18 = arith.truncf %17 : vector<16x128xf32> to vector<16x128xbf16>
    %c1 = arith.constant 1 : index
    %c0_16 = arith.constant 0 : index
    %c0_17 = arith.constant 0 : index
    %19 = vector.load %arg4[%c1, %c0_16, %c0_17] : memref<4x128x128xbf16, #tpu.memory_space<vmem>>, vector<1x128x128xbf16>
    %20 = vector.shape_cast %19 : vector<1x128x128xbf16> to vector<128x128xbf16>
    %cst_18 = arith.constant dense<0.000000e+00> : vector<16x128xf32>
    %21 = tpu.matmul %18, %20, %cst_18 {dimension_numbers = #tpu.dot_dimension_numbers<[1], [0], [0], [1], [0, 0, 1, 1], [], []>} : vector<16x128xbf16>, vector<128x128xbf16>, vector<16x128xf32> -> vector<16x128xf32>
    %c0_19 = arith.constant 0 : index
    %c256 = arith.constant 256 : index
    %22 = vector.load %arg8[%c0_19, %c256] : memref<16x640xf32, #tpu.memory_space<vmem>>, vector<16x128xf32>
    %23 = arith.addf %21, %22 : vector<16x128xf32>
    %cst_20 = arith.constant 0.000000e+00 : f32
    %24 = vector.broadcast %cst_20 : f32 to vector<16x128xf32>
    %25 = arith.maximumf %23, %24 : vector<16x128xf32>
    %26 = arith.truncf %25 : vector<16x128xf32> to vector<16x128xbf16>
    %c2 = arith.constant 2 : index
    %c0_21 = arith.constant 0 : index
    %c0_22 = arith.constant 0 : index
    %27 = vector.load %arg4[%c2, %c0_21, %c0_22] : memref<4x128x128xbf16, #tpu.memory_space<vmem>>, vector<1x128x128xbf16>
    %28 = vector.shape_cast %27 : vector<1x128x128xbf16> to vector<128x128xbf16>
    %cst_23 = arith.constant dense<0.000000e+00> : vector<16x128xf32>
    %29 = tpu.matmul %26, %28, %cst_23 {dimension_numbers = #tpu.dot_dimension_numbers<[1], [0], [0], [1], [0, 0, 1, 1], [], []>} : vector<16x128xbf16>, vector<128x128xbf16>, vector<16x128xf32> -> vector<16x128xf32>
    %c0_24 = arith.constant 0 : index
    %c384 = arith.constant 384 : index
    %30 = vector.load %arg8[%c0_24, %c384] : memref<16x640xf32, #tpu.memory_space<vmem>>, vector<16x128xf32>
    %31 = arith.addf %29, %30 : vector<16x128xf32>
    %cst_25 = arith.constant 0.000000e+00 : f32
    %32 = vector.broadcast %cst_25 : f32 to vector<16x128xf32>
    %33 = arith.maximumf %31, %32 : vector<16x128xf32>
    %34 = arith.truncf %33 : vector<16x128xf32> to vector<16x128xbf16>
    %c3 = arith.constant 3 : index
    %c0_26 = arith.constant 0 : index
    %c0_27 = arith.constant 0 : index
    %35 = vector.load %arg4[%c3, %c0_26, %c0_27] : memref<4x128x128xbf16, #tpu.memory_space<vmem>>, vector<1x128x128xbf16>
    %36 = vector.shape_cast %35 : vector<1x128x128xbf16> to vector<128x128xbf16>
    %cst_28 = arith.constant dense<0.000000e+00> : vector<16x128xf32>
    %37 = tpu.matmul %34, %36, %cst_28 {dimension_numbers = #tpu.dot_dimension_numbers<[1], [0], [0], [1], [0, 0, 1, 1], [], []>} : vector<16x128xbf16>, vector<128x128xbf16>, vector<16x128xf32> -> vector<16x128xf32>
    %c0_29 = arith.constant 0 : index
    %c512 = arith.constant 512 : index
    %38 = vector.load %arg8[%c0_29, %c512] : memref<16x640xf32, #tpu.memory_space<vmem>>, vector<16x128xf32>
    %39 = arith.addf %37, %38 : vector<16x128xf32>
    %cst_30 = arith.constant 0.000000e+00 : f32
    %40 = vector.broadcast %cst_30 : f32 to vector<16x128xf32>
    %41 = arith.maximumf %39, %40 : vector<16x128xf32>
    %42 = arith.truncf %41 : vector<16x128xf32> to vector<16x128xbf16>
    %c0_31 = arith.constant 0 : index
    %c0_32 = arith.constant 0 : index
    %43 = vector.load %arg5[%c0_31, %c0_32] : memref<128x128xbf16, #tpu.memory_space<vmem>>, vector<128x128xbf16>
    %cst_33 = arith.constant dense<0.000000e+00> : vector<16x128xf32>
    %44 = tpu.matmul %42, %43, %cst_33 {dimension_numbers = #tpu.dot_dimension_numbers<[1], [0], [0], [1], [0, 0, 1, 1], [], []>} : vector<16x128xbf16>, vector<128x128xbf16>, vector<16x128xf32> -> vector<16x128xf32>
    %c0_34 = arith.constant 0 : index
    %c0_35 = arith.constant 0 : index
    %45 = vector.load %arg6[%c0_34, %c0_35] : memref<1x128xf32, #tpu.memory_space<vmem>>, vector<1x128xf32>
    %46 = vector.broadcast %45 : vector<1x128xf32> to vector<16x128xf32>
    %47 = arith.addf %44, %46 : vector<16x128xf32>
    %48 = arith.negf %47 : vector<16x128xf32>
    %49 = math.exp %48 : vector<16x128xf32>
    %cst_36 = arith.constant 1.000000e+00 : f32
    %50 = vector.broadcast %cst_36 : f32 to vector<16x128xf32>
    %51 = arith.addf %50, %49 : vector<16x128xf32>
    %52 = arith.divf %50, %51 : vector<16x128xf32>
    %c0_37 = arith.constant 0 : index
    %c0_38 = arith.constant 0 : index
    %53 = vector.load %arg7[%c0_37, %c0_38] : memref<16x128xf32, #tpu.memory_space<vmem>>, vector<16x128xf32>
    tpu.vector_store %arg7[%c0_37, %c0_38], %52 {strides = array<i32>} : memref<16x128xf32, #tpu.memory_space<vmem>>, vector<16x128xf32>,
    return
  }
  func.func @transform_0(%arg0: i32) -> (i32, i32) {
    %c0_i32 = arith.constant 0 : i32
    %c0_i32_0 = arith.constant 0 : i32
    return %arg0, %c0_i32 : i32, i32
  }
  func.func @transform_1(%arg0: i32) -> (i32, i32) {
    %c0_i32 = arith.constant 0 : i32
    %c0_i32_0 = arith.constant 0 : i32
    %c0_i32_1 = arith.constant 0 : i32
    return %c0_i32, %c0_i32_0 : i32, i32
  }
  func.func @transform_2(%arg0: i32) -> (i32, i32) {
    %c0_i32 = arith.constant 0 : i32
    %c0_i32_0 = arith.constant 0 : i32
    %c0_i32_1 = arith.constant 0 : i32
    return %c0_i32, %c0_i32_0 : i32, i32
  }
  func.func @transform_3(%arg0: i32) -> (i32, i32, i32) {
    %c0_i32 = arith.constant 0 : i32
    %c0_i32_0 = arith.constant 0 : i32
    %c0_i32_1 = arith.constant 0 : i32
    %c0_i32_2 = arith.constant 0 : i32
    return %c0_i32, %c0_i32_0, %c0_i32_1 : i32, i32, i32
  }
  func.func @transform_4(%arg0: i32) -> (i32, i32) {
    %c0_i32 = arith.constant 0 : i32
    %c0_i32_0 = arith.constant 0 : i32
    %c0_i32_1 = arith.constant 0 : i32
    return %c0_i32, %c0_i32_0 : i32, i32
  }
  func.func @transform_5(%arg0: i32) -> (i32, i32) {
    %c0_i32 = arith.constant 0 : i32
    %c0_i32_0 = arith.constant 0 : i32
    %c0_i32_1 = arith.constant 0 : i32
    return %c0_i32, %c0_i32_0 : i32, i32
  }
  func.func @transform_6(%arg0: i32) -> (i32, i32) {
    %c0_i32 = arith.constant 0 : i32
    %c0_i32_0 = arith.constant 0 : i32
    return %arg0, %c0_i32 : i32, i32
  }
}

</mosaic_0001>

<bundles_post_ra>
// kernel: densenet_nodiag_forward.1
= control target key start
LH: loop header
LB: loop body
LE: loop exit
PB: predicated region body
PF: predicated region fallthrough
CT: control target
= control target key end

     0   :  { %11 = vsyncpa [#allocation4], 0  ;;  %s1476_s0 = inlined_call_operand.vmem [shape: bf16[32,16], index: 0, kind: input, shape index: {}]   ;;  %s1477_s1 = inlined_call_operand.vmem [shape: bf16[16,640], index: 1, kind: input, shape index: {}]   ;;  %s1478_s2 = inlined_call_operand.vmem [shape: f32[1,640], index: 2, kind: input, shape index: {}]   ;;  %s1479_s3 = inlined_call_operand.hbm [shape: bf16[4,128,128], index: 3, kind: input, shape index: {}]   ;;  %s1480_s4 = inlined_call_operand.hbm [shape: bf16[128,128], index: 4, kind: input, shape index: {}]   ;;  %s1481_s5 = inlined_call_operand.vmem [shape: f32[1,128], index: 5, kind: input, shape index: {}]   ;;  %s1482_s6 = inlined_call_operand.vmem [shape: f32[32,128], index: 6, kind: output, shape index: {}]  }
   0x1   :  { %12 = vsyncpa [#allocation6], 0  ;;  %s1372_s21 = smov 0  }
   0x2 LB: > { %s197_s24 = sshll.u32 %s1479_s3, 4  ;;  %s965_s25 = sadd.s32 4294967295, %s1331_s21   ;;  %s1331_s21 = sphi %s1372_s21, %s18_s21   ;;  %s198_s24 = int_to_ptr.hbm [resolvable:$true] %s197_s24 }
   0x3   : > { %p967_p0 = scmp.ge.s32.totalorder %s1331_s21, 1  ;;  %p180_p1 = scmp.lt.s32.totalorder %s1331_s21, 3 }
   0x4   : > { %p1383_p2 = scmp.eq.s32.totalorder %s965_s25, 0  ;;  %s1333_s28 = smov [#allocation3]  }
   0x5   : > { %p1387_p3 = pnand %p967_p0, %p180_p1  ;;  %s199_s29 = sshll.u32 %s1333_s28, 4  ;;  %s200_s29 = int_to_ptr.vmem [resolvable:$true] %s199_s29 }
   0x6   : > { %s211_s8 = sshll.u32 %s1480_s4, 4  ;;  %s1334_s9 = smov [#allocation5]   ;;  %s212_s8 = int_to_ptr.hbm [resolvable:$true] %s211_s8 }
   0x7   : > { %p1225_p4 = pneg %p1387_p3  ;;  %s213_s10 = sshll.u32 %s1334_s9, 4  ;;  %s214_s10 = int_to_ptr.vmem [resolvable:$true] %s213_s10 }
   0x8   : > { %s1335_s11 = smov 64   ;;  %s1336_s12 = smov 4  }
   0x9   : > { %p1226_p5 = pnand %p1383_p2, %p1225_p4  ;;  %241 = sbr.rel (%p1387_p3) target bundleno = 901 (0x385), region = 44 }
   0xb   : > { %1228 = dma.hbm_to_vmem [thread:$0]  (!%p1226_p5), %s198_s24, 4096, %s200_s29, [#allocation4], %s1335_s11, %s1335_s11, %s1336_s12  }
   0xc   : > { %1231 = dma.hbm_to_vmem [thread:$0]  (!%p1226_p5), %s212_s8, 1024, %s214_s10, [#allocation6], %s1335_s11, %s1335_s11, %s1336_s12  }
   0xe   : > { %1322 = dma.done.wait (%p1383_p2), [#allocation4], 4096  }
   0xf   : > { %1324 = vsyncadd (%p1383_p2), [#allocation4], 4294963200 }
  0x10   : > { %1326 = dma.done.wait (%p1383_p2), [#allocation6], 1024  }
  0x11   : > { %1328 = vsyncadd (%p1383_p2), [#allocation6], 4294966272  ;;  %s974_s13 = sshll.u32 %s965_s25, 1  ;;  %v984_v0 = vld [vmem:[%s1477_s1] sm:$0xf]  ;;  %v1184_v3 = vld [vmem:[#allocation3 + $0x38] sm:$0xff] }
  0x12   : > { %p278_p6 = scmp.lt.s32.totalorder %s974_s13, 3  ;;  %v1174_v1 = vld [vmem:[%s1477_s1 + $0x10] sm:$0xf0]  ;;  %v1172_v5 = vld [vmem:[%s1477_s1 + $0x4] sm:$0xf]  ;;  %vm341_vm0 = vcmask 130048   ;;  %496 = vmatpush.bf16.msra.mxu1 %v1184_v3 }
  0x13   : > { %v985_v2 = vor.u32 %v1174_v1, %v984_v0  ;;  %v986_v6 = vld [vmem:[%s1477_s1 + $0x14] sm:$0xf0]  ;;  %v1183_v7 = vld [vmem:[#allocation3 + $0x30] sm:$0xff]  ;;  %v1182_v9 = vld [vmem:[#allocation3 + $0x28] sm:$0xff] }
  0x14   : > { %s1486_s13 = smov (!%p278_p6, %s974_s13), 3  ;;  %v989_v8 = vor.u32 %v1172_v5, %v986_v6  ;;  %v1181_v10 = vld [vmem:[#allocation3 + $0x20] sm:$0xff]  ;;  %v1180_v11 = vld [vmem:[#allocation3 + $0x18] sm:$0xff]  ;;  %v1179_v12 = vld [vmem:[#allocation3 + $0x10] sm:$0xff] }
  0x15   : > { %s975_s14 = sshll.u32 %s1486_s13, 2  ;;  %352 = vmatpush.bf16.msra.mxu0 %v985_v2  ;;  %v1178_v13 = vld [vmem:[#allocation3 + $0x8] sm:$0xff]  ;;  %v1177_v14 = vld [vmem:[#allocation3] sm:$0xff]  ;;  %v1175_v16 = vld [vmem:[%s1477_s1 + $0x18] sm:$0xf0]  ;;  %s977_s20 = sshll.u32 %s1486_s13, 3 }
  0x16   : > { %s281_s17 = scalar_lea.vmem %s1476_s0, %s975_s14  ;;  %366 = vmatpush.bf16.msra.mxu2 %v989_v8  ;;  %497 = vmatpush.bf16.msra.mxu1 %v1183_v7  ;;  %v992_v15 = vld [vmem:[%s1477_s1 + $0x8] sm:$0xf]  ;;  %v1192_v17 = vld [vmem:[#allocation3 + $0x78] sm:$0xff]  ;;  %v1191_v19 = vld [vmem:[#allocation3 + $0x70] sm:$0xff]  ;;  %s287_s24 = scalar_lea.vmem %s1482_s6, %s977_s20 }
  0x17   : > { %v1420_v4 = vld [vmem:[%s281_s17] sm:$0xff]  ;;  %v993_v18 = vor.u32 %v1175_v16, %v992_v15  ;;  %v1190_v20 = vld [vmem:[#allocation3 + $0x68] sm:$0xff]  ;;  %v1188_v31 = vld [vmem:[#allocation3 + $0x58] sm:$0xff] }
  0x18   : > { %1002 = vmatmul.msk.bf16.vlgmr.msra.gmra.mxu0 %vm341_vm0, %v1420_v4  ;;  %v1189_v21 = vld [vmem:[#allocation3 + $0x60] sm:$0xff]  ;;  %v1187_v32 = vld [vmem:[#allocation3 + $0x50] sm:$0xff]  ;;  %v1186_v33 = vld [vmem:[#allocation3 + $0x48] sm:$0xff] }
  0x19   : > { %1003 = vmatmul.msk.bf16.vlgmr.msra.gmra.mxu2 %vm341_vm0, %v1420_v4  ;;  %v1443_v22 = vld [vmem:[%s1478_s2] sm:$0x1f]  ;;  %v1173_v35 = vld [vmem:[%s1477_s1 + $0xc] sm:$0xf]  ;;  %v1200_v37 = vld [vmem:[#allocation3 + $0xb8] sm:$0xff] }
  0x1a   : > { %498 = vmatpush.bf16.msra.mxu1 %v1182_v9  ;;  %380 = vmatpush.bf16.msrb.mxu2 %v993_v18  ;;  %v300_v24 = vperm.slane %v1443_v22, 0  ;;  %v1185_v34 = vld [vmem:[#allocation3 + $0x40] sm:$0xff]  ;;  %v1199_v39 = vld [vmem:[#allocation3 + $0xb0] sm:$0xff]  ;;  %v1198_v40 = vld [vmem:[#allocation3 + $0xa8] sm:$0xff]  ;;  %v301_v43 = vperm.slane %v1443_v22, 1  ;;  %v302_v5 = vperm.slane %v1443_v22, 2 }
  0x1b   : > { %v994_v36 = vld [vmem:[%s1477_s1 + $0x1c] sm:$0xf0]  ;;  %v1196_v54 = vld [vmem:[#allocation3 + $0x98] sm:$0xff]  ;;  %v1195_v55 = vld [vmem:[#allocation3 + $0x90] sm:$0xff] }
  0x1c   : > { %v997_v38 = vor.u32 %v1173_v35, %v994_v36  ;;  %v1197_v42 = vld [vmem:[#allocation3 + $0xa0] sm:$0xff]  ;;  %v1194_v56 = vld [vmem:[#allocation3 + $0x88] sm:$0xff]  ;;  %v1000_v59 = vld [vmem:[%s1477_s1 + $0x10] sm:$0xf] }
  0x1d   : > { %v1193_v57 = vld [vmem:[#allocation3 + $0x80] sm:$0xff]  ;;  %v1208_v61 = vld [vmem:[#allocation3 + $0xf8] sm:$0xff]  ;;  %v1207_v63 = vld [vmem:[#allocation3 + $0xf0] sm:$0xff] }
  0x1e   : > { %499 = vmatpush.bf16.msra.mxu1 %v1181_v10  ;;  %580 = vmatpush.bf16.msra.mxu2 %v1192_v17  ;;  %v1176_v60 = vld [vmem:[%s1477_s1 + $0x20] sm:$0xf0]  ;;  %v1206_v0 = vld [vmem:[#allocation3 + $0xe8] sm:$0xff]  ;;  %v1216_v18 = vld [vmem:[#allocation5 + $0x38] sm:$0xff] }
  0x1f   : > { %394 = vmatpush.bf16.msra.mxu3 %v997_v38  ;;  %v1001_v62 = vor.u32 %v1176_v60, %v1000_v59  ;;  %v1205_v2 = vld [vmem:[#allocation3 + $0xe0] sm:$0xff]  ;;  %v1202_v15 = vld [vmem:[#allocation3 + $0xc8] sm:$0xff]  ;;  %v1211_v35 = vld [vmem:[#allocation5 + $0x10] sm:$0xff] }
  0x20   : > { %v1201_v16 = vld [vmem:[#allocation3 + $0xc0] sm:$0xff]  ;;  %v1210_v36 = vld [vmem:[#allocation5 + $0x8] sm:$0xff] }
  0x21   : > { %408 = vmatpush.bf16.msrb.mxu0 %v1001_v62 }
  0x22   : > { %500 = vmatpush.bf16.msra.mxu1 %v1180_v11  ;;  %581 = vmatpush.bf16.msra.mxu2 %v1191_v19  ;;  %v1215_v19 = vld [vmem:[#allocation5 + $0x30] sm:$0xff] }
  0x23   : > { %664 = vmatpush.bf16.msrb.mxu3 %v1200_v37  ;;  %v1209_v37 = vld [vmem:[#allocation5] sm:$0xff] }
  0x24   : > { %1005 = vmatmul.msk.bf16.vlgmr.msra.gmra.mxu3 %vm341_vm0, %v1420_v4 }
  0x25   : > { %748 = vmatpush.bf16.msra.mxu0 %v1208_v61 }
  0x26   : > { %501 = vmatpush.bf16.msra.mxu1 %v1179_v12  ;;  %582 = vmatpush.bf16.msra.mxu2 %v1190_v20  ;;  %v1214_v20 = vld [vmem:[#allocation5 + $0x28] sm:$0xff] }
  0x27   : > { %665 = vmatpush.bf16.msrb.mxu3 %v1199_v39 }
  0x28   : > { %1006 = vmatmul.msk.bf16.vlgmr.msrb.gmra.mxu0 %vm341_vm0, %v1420_v4 }
  0x29   : > { %1004 = vmatmul.msk.bf16.vlgmr.msrb.gmra.mxu2 %vm341_vm0, %v1420_v4  ;;  %749 = vmatpush.bf16.msra.mxu0 %v1207_v63  ;;  %v1203_v4 = vld [vmem:[#allocation3 + $0xd0] sm:$0xff] }
  0x2a   : > { %502 = vmatpush.bf16.msra.mxu1 %v1178_v13  ;;  %583 = vmatpush.bf16.msra.mxu2 %v1189_v21 }
  0x2b   : > { %666 = vmatpush.bf16.msrb.mxu3 %v1198_v40 }
  0x2d   : > { %750 = vmatpush.bf16.msra.mxu0 %v1206_v0 }
  0x2e   : > { %503 = vmatpush.bf16.msra.mxu1 %v1177_v14  ;;  %584 = vmatpush.bf16.msra.mxu2 %v1188_v31  ;;  %v1204_v14 = vld [vmem:[#allocation3 + $0xd8] sm:$0xff] }
  0x2f   : > { %667 = vmatpush.bf16.msrb.mxu3 %v1197_v42 }
  0x31   : > { %751 = vmatpush.bf16.msra.mxu0 %v1205_v2 }
  0x32   : > { %585 = vmatpush.bf16.msra.mxu2 %v1187_v32  ;;  %833 = vmatpush.bf16.msrb.mxu1 %v1216_v18 }
  0x33   : > { %668 = vmatpush.bf16.msrb.mxu3 %v1196_v54 }
  0x35   : > { %752 = vmatpush.bf16.msra.mxu0 %v1204_v14 }
  0x36   : > { %586 = vmatpush.bf16.msra.mxu2 %v1186_v33  ;;  %834 = vmatpush.bf16.msrb.mxu1 %v1215_v19 }
  0x37   : > { %669 = vmatpush.bf16.msrb.mxu3 %v1195_v55 }
  0x39   : > { %753 = vmatpush.bf16.msra.mxu0 %v1203_v4 }
  0x3a   : > { %587 = vmatpush.bf16.msra.mxu2 %v1185_v34  ;;  %835 = vmatpush.bf16.msrb.mxu1 %v1214_v20  ;;  %v1212_v34 = vld [vmem:[#allocation5 + $0x18] sm:$0xff] }
  0x3b   : > { %670 = vmatpush.bf16.msrb.mxu3 %v1194_v56 }
  0x3d   : > { %754 = vmatpush.bf16.msra.mxu0 %v1202_v15 }
  0x3f   : > { %671 = vmatpush.bf16.msrb.mxu3 %v1193_v57 }
  0x41   : > { %755 = vmatpush.bf16.msra.mxu0 %v1201_v16 }
  0x95   : > { %v354_v23 = vpop.f32.mrf.mxu0 }
  0x96   : > { %v355_v25 = vadd.f32 %v354_v23, %v300_v24  ;;  %v1213_v23 = vld [vmem:[#allocation5 + $0x20] sm:$0xff] }
  0x97   : > { %836 = vmatpush.bf16.msrb.mxu1 %v1213_v23 }
  0x98   : > { %v427_v28 = vmax.f32 %v355_v25, 0.0  ;;  %v303_v25 = vperm.slane %v1443_v22, 3 }
  0x9b   : > { %837 = vmatpush.bf16.msrb.mxu1 %v1212_v34 }
  0x9c   : > { %v368_v41 = vpop.f32.mrf.mxu2 }
  0x9d   : > { %v356_v26 = vpop.f32.mrf.mxu0  ;;  %v369_v45 = vadd.f32 %v368_v41, %v301_v43  ;;  %v304_v41 = vperm.slane %v1443_v22, 4 }
  0x9e   : > { %v357_v27 = vadd.f32 %v356_v26, %v300_v24 }
  0x9f   : > { %838 = vmatpush.bf16.msrb.mxu1 %v1211_v35 }
  0xa0   : > { %v428_v29 = vmax.f32 %v357_v27, 0.0 }
  0xa2   : > { %v429_v30 = vpack.c.bf16 %v428_v29, %v427_v28 }
  0xa3   : > { %839 = vmatpush.bf16.msrb.mxu1 %v1210_v36 }
  0xa4   : > { %504 = vmatmul.bf16.vlgmr.msra.gmra.mxu1 %v429_v30  ;;  %v370_v46 = vpop.f32.mrf.mxu2 }
  0xa5   : > { %v371_v47 = vadd.f32 %v370_v46, %v301_v43  ;;  %v410_v38 = vpop.f32.mrf.mxu0 }
  0xa6   : > { %v411_v42 = vadd.f32 %v410_v38, %v304_v41 }
  0xa7   : > { %v396_v17 = vpop.f32.mrf.mxu3  ;;  %840 = vmatpush.bf16.msrb.mxu1 %v1209_v37 }
  0xa8   : > { %v397_v26 = vadd.f32 %v396_v17, %v303_v25 }
  0xac   : > { %v382_v58 = vpop.f32.mrf.mxu2 }
  0xad   : > { %v383_v6 = vadd.f32 %v382_v58, %v302_v5  ;;  %v412_v39 = vpop.f32.mrf.mxu0 }
  0xae   : > { %v413_v43 = vadd.f32 %v412_v39, %v304_v41 }
  0xaf   : > { %v398_v21 = vpop.f32.mrf.mxu3 }
  0xb0   : > { %v399_v27 = vadd.f32 %v398_v21, %v303_v25 }
  0xb4   : > { %v384_v1 = vpop.f32.mrf.mxu2 }
  0xb5   : > { %v385_v7 = vadd.f32 %v384_v1, %v302_v5 }
 0x121   : > { %v505_v44 = vpop.f32.mrf.mxu1 }
 0x122   : > { %v506_v48 = vadd.f32 %v505_v44, %v369_v45 }
 0x124   : > { %v510_v51 = vmax.f32 %v506_v48, 0.0 }
 0x129   : > { %v507_v49 = vpop.f32.mrf.mxu1 }
 0x12a   : > { %v508_v50 = vadd.f32 %v507_v49, %v371_v47 }
 0x12c   : > { %v511_v52 = vmax.f32 %v508_v50, 0.0  ;;  %v1248_v50 = vld [vmem:[%s1481_s5] ss:$0 sm:$0xff] }
 0x12e   : > { %v512_v53 = vpack.c.bf16 %v511_v52, %v510_v51 }
 0x130   : > { %588 = vmatmul.bf16.vlgmr.msra.gmra.mxu2 %v512_v53 }
 0x1b3   : > { %v589_v3 = vpop.f32.mrf.mxu2 }
 0x1b4   : > { %v590_v8 = vadd.f32 %v589_v3, %v383_v6 }
 0x1b6   : > { %v594_v11 = vmax.f32 %v590_v8, 0.0 }
 0x1bb   : > { %v591_v9 = vpop.f32.mrf.mxu2 }
 0x1bc   : > { %v592_v10 = vadd.f32 %v591_v9, %v385_v7 }
 0x1be   : > { %v595_v12 = vmax.f32 %v592_v10, 0.0 }
 0x1c0   : > { %v596_v13 = vpack.c.bf16 %v595_v12, %v594_v11 }
 0x1c2   : > { %672 = vmatmul.bf16.vlgmr.msrb.gmra.mxu3 %v596_v13 }
 0x245   : > { %v673_v24 = vpop.f32.mrf.mxu3 }
 0x246   : > { %v674_v28 = vadd.f32 %v673_v24, %v397_v26 }
 0x248   : > { %v678_v31 = vmax.f32 %v674_v28, 0.0 }
 0x24d   : > { %v675_v29 = vpop.f32.mrf.mxu3 }
 0x24e   : > { %v676_v30 = vadd.f32 %v675_v29, %v399_v27 }
 0x250   : > { %v679_v32 = vmax.f32 %v676_v30, 0.0 }
 0x252   : > { %v680_v33 = vpack.c.bf16 %v679_v32, %v678_v31 }
 0x254   : > { %756 = vmatmul.bf16.vlgmr.msra.gmra.mxu0 %v680_v33 }
 0x2d1   : > { %v757_v40 = vpop.f32.mrf.mxu0 }
 0x2d2   : > { %v758_v44 = vadd.f32 %v757_v40, %v411_v42 }
 0x2d4   : > { %v762_v47 = vmax.f32 %v758_v44, 0.0 }
 0x2d9   : > { %v759_v45 = vpop.f32.mrf.mxu0 }
 0x2da   : > { %v760_v46 = vadd.f32 %v759_v45, %v413_v43 }
 0x2dc   : > { %v763_v48 = vmax.f32 %v760_v46, 0.0 }
 0x2de   : > { %v764_v49 = vpack.c.bf16 %v763_v48, %v762_v47 }
 0x2e0   : > { %841 = vmatmul.bf16.vlgmr.msrb.gmra.mxu1 %v764_v49 }
 0x35d   : > { %v842_v51 = vpop.f32.mrf.mxu1 }
 0x35e   : > { %v843_v52 = vadd.f32 %v1248_v50, %v842_v51 }
 0x360   : > { %v1167_v53 = vmul.f32 -1.442695, %v843_v52 }
 0x362   : > { %1249 = vpow2.f32 %v1167_v53 }
 0x365   : > { %v844_v54 = vpop.f32.mrf.mxu1 }
 0x366   : > { %v845_v22 = vadd.f32 %v1248_v50, %v844_v54 }
 0x368   : > { %v1250_v55 = vpop.eup %1249  ;;  %v1168_v56 = vmul.f32 -1.442695, %v845_v22 }
 0x369   : > { %v853_v57 = vadd.f32 1.0, %v1250_v55 }
 0x36a   : > { %1251 = vpow2.f32 %v1168_v56 }
 0x36b   : > { %1253 = vrcp.f32 %v853_v57  ;;  %v866_v63 = vand.u32 2147483648, %v853_v57  ;;  %v864_v1 = vand.u32 2147483647, %v853_v57  ;;  %vm860_vm2 = vweird.f32 %v853_v57 }
 0x36d   : > { %v867_v5 = vor.u32 1.1754944e-38, %v866_v63  ;;  %vm865_vm4 = vcmp.eq.f32.partialorder %v864_v1, 8.507059e+37 }
 0x370   : > { %v1252_v58 = vpop.eup %1251 }
 0x371   : > { %v1254_v59 = vpop.eup %1253  ;;  %v854_v60 = vadd.f32 1.0, %v1252_v58 }
 0x372   : > { %v856_v61 = vmul.f32 %v1254_v59, %v853_v57  ;;  %vm861_vm1 = vweird.f32 %v1254_v59 }
 0x373   : > { %1255 = vrcp.f32 %v854_v60  ;;  %vm862_vm3 = vmor %vm860_vm2, %vm861_vm1  ;;  %v881_v10 = vand.u32 2147483648, %v854_v60  ;;  %v879_v12 = vand.u32 2147483647, %v854_v60  ;;  %vm875_vm6 = vweird.f32 %v854_v60 }
 0x374   : > { %v857_v62 = vsub.f32 1.0, %v856_v61 }
 0x375   : > { %v882_v14 = vor.u32 1.1754944e-38, %v881_v10  ;;  %vm880_vm8 = vcmp.eq.f32.partialorder %v879_v12, 8.507059e+37 }
 0x376   : > { %v858_v0 = vmul.f32 %v1254_v59, %v857_v62 }
 0x378   : > { %v859_v2 = vadd.f32 %v1254_v59, %v858_v0 }
 0x379   : > { %v1256_v3 = vpop.eup %1255 }
 0x37a   : > { %v863_v6 = vsel %vm862_vm3, %v1254_v59, %v859_v2  ;;  %v871_v7 = vmul.f32 %v1256_v3, %v854_v60  ;;  %vm876_vm5 = vweird.f32 %v1256_v3 }
 0x37b   : > { %v868_v8 = vsel %vm865_vm4, %v867_v5, %v863_v6  ;;  %vm877_vm7 = vmor %vm875_vm6, %vm876_vm5 }
 0x37c   : > { %885 = vst [vmem:[%s287_s24] sm:$0xff] %v868_v8  ;;  %v872_v9 = vsub.f32 1.0, %v871_v7 }
 0x37e   : > { %v873_v11 = vmul.f32 %v1256_v3, %v872_v9 }
 0x380   : > { %v874_v13 = vadd.f32 %v1256_v3, %v873_v11 }
 0x382   : > { %v878_v4 = vsel %vm877_vm7, %v1256_v3, %v874_v13 }
 0x383   : > { %v883_v15 = vsel %vm880_vm8, %v882_v14, %v878_v4 }
 0x384   : > { %886 = vst [vmem:[%s287_s24 + $0x8] sm:$0xff] %v883_v15 }
 0x385 PF: > { %s18_s21 = sadd.s32 1, %s1331_s21  }
 0x386   : > { %p15_p7 = scmp.ge.s32.totalorder %s18_s21, 4  }
 0x388   :  { %17 = sbr.rel (!%p15_p7) target bundleno = 2 (0x2), region = 86 }
 0x38d   :  { %909 = vsyncpa [#allocation4], 1 }
 0x38e   :  { %911 = vsyncpa [#allocation4 + $0x1], 1 }
 0x38f   :  { %912 = vsyncpa [#allocation6], 1 }

</bundles_post_ra>
